<compile_context>
chip_gen: v6e
topology: v6e:2x2x1
jax: 0.10.0
libtpu: 0.0.40
codegen_flags: <defaults>
</compile_context>

<pallas_src>
import functools
import math

import jax
import jax.numpy as jnp
from jax import lax
from jax.experimental import pallas as pl
from jax.experimental.pallas import tpu as pltpu

_MIB = 1 << 20
# Per inner-loop pass, intermediates are kept to roughly this many f32 elements
# (~128 KiB, ~32 vregs per live value) so the iota/cmp/select/reduce chain stays
# close to the vector register file instead of spilling a (row_tile, V) temp.
_TARGET_CHUNK_ELEMS = 32 * 1024
_LANE_CHUNK = 512            # lane sub-chunk (multiple of 128) for large vocabs


def _cdiv(a: int, b: int) -> int:
    return -(-a // b)


def _round_up(x: int, m: int) -> int:
    return _cdiv(x, m) * m


def _vmem_capacity_bytes() -> int:
    try:
        cap = int(pltpu.get_tpu_info().vmem_capacity_bytes)
        if cap > 0:
            return cap
    except Exception:
        pass
    return 64 * _MIB          # conservative fallback (v7x per-TensorCore size)


def _cores_per_chip() -> int:
    """Best-effort TensorCores-per-chip detection (defaults to 1 if unknown)."""
    try:
        info = pltpu.get_tpu_info()
        for name in ("num_cores", "core_count", "num_tensorcores",
                     "tensorcores_per_chip", "cores_per_chip"):
            v = getattr(info, name, None)
            if v is None:
                continue
            try:
                v = int(v)
            except (TypeError, ValueError):
                continue
            if v >= 1:
                return v
    except Exception:
        pass
    try:
        if "v7" in jax.devices()[0].device_kind.lower():
            return 2
    except Exception:
        pass
    return 1


def _choose_chunking(rt: int, V: int):
    """(row, lane) sub-chunk sizes for the in-kernel compute loops."""
    vchunk = V if V <= _LANE_CHUNK else _LANE_CHUNK
    rchunk = max(8, min(rt, (_TARGET_CHUNK_ELEMS // vchunk) // 8 * 8))
    return rchunk, vchunk


def _choose_tiling(N: int, V: int, num_parts: int, budget_bytes: int,
                   itemsize: int, max_rows=None):
    rows_per_part = _cdiv(N, num_parts)
    bytes_per_row = V * itemsize
    # Largest row tile whose double-buffered prediction block fits the budget.
    cap_rows = max(8, (budget_bytes // (2 * bytes_per_row)) // 8 * 8)
    # Bytes-based target (not a fixed row cap): multi-MiB DMA tiles amortize the
    # fixed per-grid-step cost even for small / moderate vocabularies.
    target_bytes = min(32 * _MIB, budget_bytes // 2)
    target_rows = _round_up(max(8, target_bytes // bytes_per_row), 8)
    rt = min(cap_rows, target_rows)
    # Keep worst-case padding below ~1/8 of one part's rows, and never pad past
    # the rows that actually exist.
    rt = min(rt, max(512, _round_up(_cdiv(rows_per_part, 8), 8)))
    rt = min(rt, _round_up(rows_per_part, 8))
    if max_rows is not None:
        rt = min(rt, _round_up(int(max_rows), 8))
    rt = max(rt, 8)
    rchunk, vchunk = _choose_chunking(rt, V)
    padded_N = _round_up(N, num_parts * rt)
    steps = padded_N // (num_parts * rt)
    return rt, rchunk, vchunk, padded_N, steps


def _loss_ls_kernel(pred_ref, tgt_ref, num_ref, den_ref, acc_num, acc_den, *,
                    confidence: float, off_value: float, entropy: float,
                    rchunk: int, vchunk: int):
    """Grid = (part, step); one step processes a (row_tile, V) block of pred."""
    i = pl.program_id(1)

    @pl.when(i == 0)
    def _init():
        acc_num[...] = jnp.zeros_like(acc_num)
        acc_den[...] = jnp.zeros_like(acc_den)

    rt, V = pred_ref.shape
    n_vfull, v_tail = V // vchunk, V % vchunk
    n_rfull, r_tail = rt // rchunk, rt % rchunk
    scale = confidence - off_value

    def dot_chunk(p_chunk, tgt_local):
        # sum_v labels*pred over this lane chunk. The per-element multiply is
        # replaced by two lane reductions (XLU) + two post-reduction scalings:
        #   off * sum(pred) + (conf - off) * pred[target]
        p = p_chunk.astype(jnp.float32)
        col = lax.broadcasted_iota(jnp.int32, p.shape, 1)
        at_tgt = jnp.where(col == tgt_local, p, 0.0)
        return (off_value * jnp.sum(p, axis=1, keepdims=True)
                + scale * jnp.sum(at_tgt, axis=1, keepdims=True))

    def row_block(r0, nrows):
        rows = pl.ds(r0, nrows)
        tgt_r = tgt_ref[rows, :]                          # (nrows, 1) int32

        if n_vfull == 1 and v_tail == 0:
            dot = dot_chunk(pred_ref[rows, :], tgt_r)
        else:
            def vbody(c, dot):
                off = pl.multiple_of(c * vchunk, 128)
                return dot + dot_chunk(pred_ref[rows, pl.ds(off, vchunk)],
                                       tgt_r - off)

            dot = lax.fori_loop(0, n_vfull, vbody,
                                jnp.zeros((nrows, 1), jnp.float32))
            if v_tail:
                off = n_vfull * vchunk                    # static tail chunk
                dot = dot + dot_chunk(pred_ref[rows, pl.ds(off, v_tail)],
                                      tgt_r - off)

        mask = tgt_r > 0
        # NaN-safe: padded / masked rows contribute exactly zero.
        acc_num[rows, :] += jnp.where(mask, entropy - dot, 0.0)
        acc_den[rows, :] += mask.astype(jnp.float32)

    if n_rfull == 1:
        row_block(0, rchunk)
    elif n_rfull > 1:
        def rbody(r, carry):
            row_block(pl.multiple_of(r * rchunk, 8), rchunk)
            return carry

        lax.fori_loop(0, n_rfull, rbody, 0)
    if r_tail:
        row_block(n_rfull * rchunk, r_tail)               # static row tail

    @pl.when(i == pl.num_programs(1) - 1)
    def _finalize():
        # Single cross-sublane reduction in the epilogue; broadcast the scalar
        # into a lane-dense (8, 128) output block (unmasked vst).
        num_ref[...] = jnp.broadcast_to(
            jnp.sum(acc_num[...], axis=0, keepdims=True), num_ref.shape)
        den_ref[...] = jnp.broadcast_to(
            jnp.sum(acc_den[...], axis=0, keepdims=True), den_ref.shape)


def loss_with_ls(prediction, target, *, size: int, smooth: float,
                 num_parts=None, max_rows_per_step=None):
    """prediction: (B, T, V) log-probabilities (f32 or bf16); target: (B, T)."""
    if not (0.0 < float(smooth) < 1.0):
        raise ValueError(
            "loss_with_ls requires 0 < smooth < 1 (the PyTorch reference "
            "produces NaN via 0*log(0) when smooth == 0).")
    B, T, V = prediction.shape
    if V != size:
        raise ValueError(f"size={size} must equal the vocab dim {V}")
    N = B * T

    # Stream prediction in its incoming dtype (bf16 halves HBM traffic when the
    # producer emits it); accumulate in f32 inside the kernel.
    if prediction.dtype not in (jnp.float32, jnp.bfloat16):
        prediction = prediction.astype(jnp.float32)
    pred2d = prediction.reshape(N, V)
    tgt2d = target.reshape(N, 1).astype(jnp.int32)
    itemsize = pred2d.dtype.itemsize

    cores = _cores_per_chip()
    if num_parts is None:
        num_parts = 2 if (cores >= 2 and N >= 16) else 1
    num_parts = max(1, min(int(num_parts), 2))

    vmem_cap = _vmem_capacity_bytes()
    # ~80% of physical VMEM (≈100 MiB on v5e/v6e's 128 MiB, ≈51 MiB on v7x's
    # 64 MiB per TensorCore) with fixed headroom for compiler-internal scratch.
    vmem_limit = max(32 * _MIB, min(int(vmem_cap * 0.80), vmem_cap - 12 * _MIB))
    tiling_budget = max(8 * _MIB, vmem_limit - 8 * _MIB)

    rt, rchunk, vchunk, padded_N, steps = _choose_tiling(
        N, V, num_parts, tiling_budget, itemsize, max_rows_per_step)

    if padded_N != N:
        pad = padded_N - N
        # Padded rows: pred = 0 (finite), target = 0 -> masked out in-kernel.
        pred2d = jnp.pad(pred2d, ((0, pad), (0, 0)))
        tgt2d = jnp.pad(tgt2d, ((0, pad), (0, 0)))

    confidence = float(1.0 - smooth)
    off_value = float(smooth / (size - 1))
    # Row entropy of the two-valued smoothed label distribution (trace-time
    # constant); eliminates every in-kernel log.
    entropy = (confidence * math.log(confidence)
               + (size - 1) * off_value * math.log(off_value))

    kernel = functools.partial(_loss_ls_kernel, confidence=confidence,
                               off_value=off_value, entropy=entropy,
                               rchunk=rchunk, vchunk=vchunk)

    # Double-buffered pred tile + target tiles + scratch + headroom.
    needed = 2 * rt * V * itemsize + 4 * rt * 4 + 4 * _MIB
    vmem_limit = int(min(max(vmem_limit, needed), vmem_cap))

    if num_parts > 1:
        # Shard the part axis across the chip's TensorCores (v7x).
        dim_sem = (pltpu.CORE_PARALLEL, pltpu.ARBITRARY)
    else:
        dim_sem = ("arbitrary", "arbitrary")

    num_out, den_out = pl.pallas_call(
        kernel,
        out_shape=(
            jax.ShapeDtypeStruct((num_parts * 8, 128), jnp.float32),
            jax.ShapeDtypeStruct((num_parts * 8, 128), jnp.float32),
        ),
        grid_spec=pltpu.PrefetchScalarGridSpec(
            num_scalar_prefetch=0,
            grid=(num_parts, steps),
            in_specs=[
                pl.BlockSpec((rt, V), lambda p, i: (p * steps + i, 0)),
                pl.BlockSpec((rt, 1), lambda p, i: (p * steps + i, 0)),
            ],
            out_specs=[
                pl.BlockSpec((8, 128), lambda p, i: (p, 0)),
                pl.BlockSpec((8, 128), lambda p, i: (p, 0)),
            ],
            scratch_shapes=[
                pltpu.VMEM((rt, 1), jnp.float32),   # per-row numerator accumulator
                pltpu.VMEM((rt, 1), jnp.float32),   # per-row mask-count accumulator
            ],
        ),
        compiler_params=pltpu.CompilerParams(
            dimension_semantics=dim_sem,
            vmem_limit_bytes=vmem_limit,
        ),
        cost_estimate=pl.CostEstimate(
            flops=4 * padded_N * V,
            transcendentals=0,
            bytes_accessed=padded_N * V * itemsize + padded_N * 4
                           + 2 * num_parts * 8 * 128 * 4,
        ),
    )(pred2d, tgt2d)

    num_total = jnp.sum(num_out.reshape(num_parts, 8, 128)[:, 0, 0])
    den_total = jnp.sum(den_out.reshape(num_parts, 8, 128)[:, 0, 0])
    # Division outside the kernel; an all-masked batch yields 0/0 = NaN, which
    # matches the PyTorch reference (mask.sum() == 0).
    return num_total / den_total


def _loss_with_ls_ref(prediction, target, *, size: int, smooth: float):
    """Pure-JAX reference mirroring the PyTorch forward."""
    B, T, V = prediction.shape
    pred = prediction.reshape(-1, V).astype(jnp.float32)
    tgt = target.reshape(-1)
    mask = (tgt > 0).astype(jnp.float32)
    confidence = 1.0 - smooth
    labels = jnp.full_like(pred, smooth / (size - 1))
    labels = labels.at[jnp.arange(pred.shape[0]), tgt].set(confidence)
    loss = labels * (jnp.log(labels) - pred)       # KLDivLoss(reduction='none')
    return (loss.sum(1) * mask).sum() / mask.sum()


if __name__ == "__main__":
    smooth = 0.1
    key = jax.random.PRNGKey(0)
    ks = jax.random.split(key, 8)

    def run_case(kp, kt, B, T, V, **kw):
        logits = jax.random.normal(kp, (B, T, V), dtype=jnp.float32)
        prediction = jax.nn.log_softmax(logits, axis=-1)     # log-probabilities
        target = jax.random.randint(kt, (B, T), minval=0, maxval=V,
                                    dtype=jnp.int32)         # 0 = padding
        out = jax.block_until_ready(
            loss_with_ls(prediction, target, size=V, smooth=smooth, **kw))
        ref = _loss_with_ls_ref(prediction, target, size=V, smooth=smooth)
        assert jnp.allclose(out, ref, rtol=1e-4, atol=1e-4), (B, T, V, out, ref)

    # Small shapes consistent with the module: (batch, max_words, vocab_size).
    run_case(ks[0], ks[1], 2, 8, 32)                          # tiny, single chunk
    run_case(ks[2], ks[3], 2, 7, 48)                          # row-padding path
    run_case(ks[4], ks[5], 4, 8, 256, max_rows_per_step=8)    # multi-grid-step accum
    run_case(ks[6], ks[7], 17, 8, 1152)                       # lane-chunk loop + tails

    print("KERNEL_OK")
</pallas_src>

<mosaic_0001>
module attributes {stable_mosaic.version = 11 : i64} {
  func.func @_loss_ls_kernel(%arg0: i32, %arg1: i32, %arg2: memref<16x32xf32, #tpu.memory_space<vmem>>, %arg3: memref<16x1xi32, #tpu.memory_space<vmem>>, %arg4: memref<8x128xf32, #tpu.memory_space<vmem>>, %arg5: memref<8x128xf32, #tpu.memory_space<vmem>>, %arg6: memref<16x1xf32, #tpu.memory_space<vmem>>, %arg7: memref<16x1xf32, #tpu.memory_space<vmem>>) attributes {dimension_semantics = [#tpu.dimension_semantics<arbitrary>, #tpu.dimension_semantics<arbitrary>], iteration_bounds = array<i64: 1, 1>, scalar_prefetch = 0 : i64, scratch_operands = 2 : i64, tpu.core_type = #tpu.core_type<tc>, window_params = [{transform_indices = @transform_0, window_bounds = array<i64: 16, 32>}, {transform_indices = @transform_1, window_bounds = array<i64: 16, 1>}, {transform_indices = @transform_2, window_bounds = array<i64: 8, 128>}, {transform_indices = @transform_3, window_bounds = array<i64: 8, 128>}]} {
    %c0_i32 = arith.constant 0 : i32
    %0 = arith.cmpi eq, %arg1, %c0_i32 : i32
    %1 = arith.extui %0 : i1 to i32
    %c0_i32_0 = arith.constant 0 : i32
    %2 = arith.cmpi ne, %1, %c0_i32_0 : i32
    scf.if %2 {
      %cst_21 = arith.constant 0.000000e+00 : f32
      %36 = vector.broadcast %cst_21 : f32 to vector<16x1xf32>
      %c0_22 = arith.constant 0 : index
      %c0_23 = arith.constant 0 : index
      %37 = vector.load %arg6[%c0_22, %c0_23] : memref<16x1xf32, #tpu.memory_space<vmem>>, vector<16x1xf32>
      tpu.vector_store %arg6[%c0_22, %c0_23], %36 {strides = array<i32>} : memref<16x1xf32, #tpu.memory_space<vmem>>, vector<16x1xf32>,
      %cst_24 = arith.constant 0.000000e+00 : f32
      %38 = vector.broadcast %cst_24 : f32 to vector<16x1xf32>
      %c0_25 = arith.constant 0 : index
      %c0_26 = arith.constant 0 : index
      %39 = vector.load %arg7[%c0_25, %c0_26] : memref<16x1xf32, #tpu.memory_space<vmem>>, vector<16x1xf32>
      tpu.vector_store %arg7[%c0_25, %c0_26], %38 {strides = array<i32>} : memref<16x1xf32, #tpu.memory_space<vmem>>, vector<16x1xf32>,
    } else {
    }
    %c0 = arith.constant 0 : index
    %c0_1 = arith.constant 0 : index
    %3 = vector.load %arg3[%c0, %c0_1] : memref<16x1xi32, #tpu.memory_space<vmem>>, vector<16x1xi32>
    %c0_2 = arith.constant 0 : index
    %c0_3 = arith.constant 0 : index
    %4 = vector.load %arg2[%c0_2, %c0_3] : memref<16x32xf32, #tpu.memory_space<vmem>>, vector<16x32xf32>
    %5 = tpu.iota {dimensions = array<i32: 1>} : vector<16x32xi32>
    %6 = vector.broadcast %3 : vector<16x1xi32> to vector<16x32xi32>
    %7 = arith.cmpi eq, %5, %6 : vector<16x32xi32>
    %cst = arith.constant 0.000000e+00 : f32
    %8 = vector.broadcast %cst : f32 to vector<16x32xf32>
    %9 = arith.select %7, %4, %8 : vector<16x32xi1>, vector<16x32xf32>
    %cst_4 = arith.constant dense<0.000000e+00> : vector<16xf32>
    %10 = vector.multi_reduction <add>, %4, %cst_4 [1] : vector<16x32xf32> to vector<16xf32>
    %11 = vector.shape_cast %10 : vector<16xf32> to vector<16x1xf32>
    %cst_5 = arith.constant 0.0032258064 : f32
    %12 = vector.broadcast %cst_5 : f32 to vector<16x1xf32>
    %13 = arith.mulf %12, %11 : vector<16x1xf32>
    %cst_6 = arith.constant dense<0.000000e+00> : vector<16xf32>
    %14 = vector.multi_reduction <add>, %9, %cst_6 [1] : vector<16x32xf32> to vector<16xf32>
    %15 = vector.shape_cast %14 : vector<16xf32> to vector<16x1xf32>
    %cst_7 = arith.constant 0.896774172 : f32
    %16 = vector.broadcast %cst_7 : f32 to vector<16x1xf32>
    %17 = arith.mulf %16, %15 : vector<16x1xf32>
    %18 = arith.addf %13, %17 : vector<16x1xf32>
    %c0_i32_8 = arith.constant 0 : i32
    %19 = vector.broadcast %c0_i32_8 : i32 to vector<16x1xi32>
    %20 = arith.cmpi sgt, %3, %19 : vector<16x1xi32>
    %c0_9 = arith.constant 0 : index
    %c0_10 = arith.constant 0 : index
    %21 = vector.load %arg6[%c0_9, %c0_10] : memref<16x1xf32, #tpu.memory_space<vmem>>, vector<16x1xf32>
    %cst_11 = arith.constant -0.668481708 : f32
    %22 = vector.broadcast %cst_11 : f32 to vector<16x1xf32>
    %23 = arith.subf %22, %18 : vector<16x1xf32>
    %cst_12 = arith.constant 0.000000e+00 : f32
    %24 = vector.broadcast %cst_12 : f32 to vector<16x1xf32>
    %25 = arith.select %20, %23, %24 : vector<16x1xi1>, vector<16x1xf32>
    %26 = arith.addf %21, %25 : vector<16x1xf32>
    %c0_13 = arith.constant 0 : index
    %c0_14 = arith.constant 0 : index
    %27 = vector.load %arg6[%c0_13, %c0_14] : memref<16x1xf32, #tpu.memory_space<vmem>>, vector<16x1xf32>
    tpu.vector_store %arg6[%c0_13, %c0_14], %26 {strides = array<i32>} : memref<16x1xf32, #tpu.memory_space<vmem>>, vector<16x1xf32>,
    %c0_15 = arith.constant 0 : index
    %c0_16 = arith.constant 0 : index
    %28 = vector.load %arg7[%c0_15, %c0_16] : memref<16x1xf32, #tpu.memory_space<vmem>>, vector<16x1xf32>
    %29 = arith.extui %20 : vector<16x1xi1> to vector<16x1xi32>
    %30 = arith.sitofp %29 : vector<16x1xi32> to vector<16x1xf32>
    %31 = arith.addf %28, %30 : vector<16x1xf32>
    %c0_17 = arith.constant 0 : index
    %c0_18 = arith.constant 0 : index
    %32 = vector.load %arg7[%c0_17, %c0_18] : memref<16x1xf32, #tpu.memory_space<vmem>>, vector<16x1xf32>
    tpu.vector_store %arg7[%c0_17, %c0_18], %31 {strides = array<i32>} : memref<16x1xf32, #tpu.memory_space<vmem>>, vector<16x1xf32>,
    %c0_i32_19 = arith.constant 0 : i32
    %33 = arith.cmpi eq, %arg1, %c0_i32_19 : i32
    %34 = arith.extui %33 : i1 to i32
    %c0_i32_20 = arith.constant 0 : i32
    %35 = arith.cmpi ne, %34, %c0_i32_20 : i32
    scf.if %35 {
      %c0_21 = arith.constant 0 : index
      %c0_22 = arith.constant 0 : index
      %36 = vector.load %arg6[%c0_21, %c0_22] : memref<16x1xf32, #tpu.memory_space<vmem>>, vector<16x1xf32>
      %cst_23 = arith.constant dense<0.000000e+00> : vector<1xf32>
      %37 = vector.multi_reduction <add>, %36, %cst_23 [0] : vector<16x1xf32> to vector<1xf32>
      %38 = vector.shape_cast %37 : vector<1xf32> to vector<1x1xf32>
      %39 = vector.shape_cast %38 : vector<1x1xf32> to vector<1x1xf32>
      %40 = vector.broadcast %39 : vector<1x1xf32> to vector<8x128xf32>
      %c0_24 = arith.constant 0 : index
      %c0_25 = arith.constant 0 : index
      %41 = vector.load %arg4[%c0_24, %c0_25] : memref<8x128xf32, #tpu.memory_space<vmem>>, vector<8x128xf32>
      tpu.vector_store %arg4[%c0_24, %c0_25], %40 {strides = array<i32>} : memref<8x128xf32, #tpu.memory_space<vmem>>, vector<8x128xf32>,
      %c0_26 = arith.constant 0 : index
      %c0_27 = arith.constant 0 : index
      %42 = vector.load %arg7[%c0_26, %c0_27] : memref<16x1xf32, #tpu.memory_space<vmem>>, vector<16x1xf32>
      %cst_28 = arith.constant dense<0.000000e+00> : vector<1xf32>
      %43 = vector.multi_reduction <add>, %42, %cst_28 [0] : vector<16x1xf32> to vector<1xf32>
      %44 = vector.shape_cast %43 : vector<1xf32> to vector<1x1xf32>
      %45 = vector.shape_cast %44 : vector<1x1xf32> to vector<1x1xf32>
      %46 = vector.broadcast %45 : vector<1x1xf32> to vector<8x128xf32>
      %c0_29 = arith.constant 0 : index
      %c0_30 = arith.constant 0 : index
      %47 = vector.load %arg5[%c0_29, %c0_30] : memref<8x128xf32, #tpu.memory_space<vmem>>, vector<8x128xf32>
      tpu.vector_store %arg5[%c0_29, %c0_30], %46 {strides = array<i32>} : memref<8x128xf32, #tpu.memory_space<vmem>>, vector<8x128xf32>,
    } else {
    }
    return
  }
  func.func @transform_0(%arg0: i32, %arg1: i32) -> (i32, i32) {
    %c1_i32 = arith.constant 1 : i32
    %0 = arith.muli %arg0, %c1_i32 : i32
    %1 = arith.addi %0, %arg1 : i32
    %c0_i32 = arith.constant 0 : i32
    %c0_i32_0 = arith.constant 0 : i32
    return %1, %c0_i32 : i32, i32
  }
  func.func @transform_1(%arg0: i32, %arg1: i32) -> (i32, i32) {
    %c1_i32 = arith.constant 1 : i32
    %0 = arith.muli %arg0, %c1_i32 : i32
    %1 = arith.addi %0, %arg1 : i32
    %c0_i32 = arith.constant 0 : i32
    %c0_i32_0 = arith.constant 0 : i32
    return %1, %c0_i32 : i32, i32
  }
  func.func @transform_2(%arg0: i32, %arg1: i32) -> (i32, i32) {
    %c0_i32 = arith.constant 0 : i32
    %c0_i32_0 = arith.constant 0 : i32
    return %arg0, %c0_i32 : i32, i32
  }
  func.func @transform_3(%arg0: i32, %arg1: i32) -> (i32, i32) {
    %c0_i32 = arith.constant 0 : i32
    %c0_i32_0 = arith.constant 0 : i32
    return %arg0, %c0_i32 : i32, i32
  }
}

</mosaic_0001>

<bundles_post_ra>
// kernel: tpu_custom_call.1
= control target key start
LH: loop header
LB: loop body
LE: loop exit
PB: predicated region body
PF: predicated region fallthrough
CT: control target
= control target key end

     0   :  { %9 = vsyncpa [#allocation5], 0  ;;  %vm63_vm0 = vcmask 7168   ;;  %v255_v2 = vmov 0   ;;  %v256_v3 = vmov 0.0   ;;  %vm84_vm1 = vcmask 261120   ;;  %s317_s0 = inlined_call_operand.vmem [shape: f32[16,32], index: 0, kind: input, shape index: {}]   ;;  %s318_s1 = inlined_call_operand.vmem [shape: s32[16,1], index: 1, kind: input, shape index: {}]   ;;  %s319_s2 = inlined_call_operand.hbm [shape: f32[8,128], index: 2, kind: output, shape index: {0}]   ;;  %s320_s3 = inlined_call_operand.hbm [shape: f32[8,128], index: 3, kind: output, shape index: {1}]  }
   0x1   :  { %v68_v0 = vld [vmem:[%s318_s1] sm:$0xff]  ;;  %209 = vset.pattern.permute.xlu0 %v255_v2  ;;  %66 = vst.msk [vmem:[#allocation3] sm:$0xff] %vm63_vm0, %v256_v3  ;;  %64 = vst.msk [vmem:[#allocation2] sm:$0xff] %vm63_vm0, %v256_v3  ;;  %v71_v4 = vld [vmem:[%s317_s0 + $0x8] sm:$0xff]  ;;  %210 = vset.pattern.permute.xlu1 %v255_v2 }
   0x2   :  { %v70_v1 = vld [vmem:[%s317_s0] sm:$0xff]  ;;  %65 = vst.msk [vmem:[#allocation2 + $0x8] sm:$0xff] %vm63_vm0, %v256_v3  ;;  %67 = vst.msk [vmem:[#allocation3 + $0x8] sm:$0xff] %vm63_vm0, %v256_v3 }
   0x3   :  { %10 = vsyncpa [#allocation7], 0  ;;  %75 = vperm.xlu0 %209, %v68_v0   ;;  %v85_v5 = vsel %vm84_vm1, %v70_v1, 0.0  ;;  %v69_v6 = vld [vmem:[%s318_s1 + $0x8] sm:$0xff]  ;;  %v88_v7 = vsel %vm84_vm1, %v71_v4, 0.0  ;;  %vm103_vm2 = vcmp.gt.s32.totalorder %v68_v0, 0  ;;  %v72_v14 = vlaneseq }
   0x4   :  { %86 = vadd.xlane.f32.xlu1 %v85_v5  ;;  %vm104_vm3 = vcmp.gt.s32.totalorder %v69_v6, 0  ;;  %v203_v8 = vsel %vm103_vm2, 1.0, %v256_v3  ;;  %s257_s0 = smov [#allocation4]   ;;  %s258_s20 = smov [#allocation6]  }
   0x5   :  { %v204_v9 = vsel %vm104_vm3, 1.0, %v256_v3  ;;  %v73_v15 = vand.u32 127, %v72_v14  ;;  %s169_s1 = sshll.u32 %s257_s0, 4  ;;  %s179_s21 = sshll.u32 %s258_s20, 4  ;;  %s170_s1 = int_to_ptr.vmem [resolvable:$true] %s169_s1  ;;  %s180_s21 = int_to_ptr.vmem [resolvable:$true] %s179_s21 }
   0x6   :  { %s211_s22 = scalar_lea.vmem %s170_s1, 128  ;;  %p216_p1 = scmp.lt.s32.totalorder %s170_s1, %s170_s1 }
   0x7   :  { %78 = vperm.xlu0 %209, %v69_v6   ;;  %p212_p0 = scmp.ne.s32.totalorder %s170_s1, %s211_s22  ;;  %p217_p2 = scmp.lt.s32.totalorder %s211_s22, %s211_s22 }
   0x8   :  { %89 = vadd.xlane.f32.xlu1 %v88_v7  ;;  %v116_v10 = vld [vmem:[#allocation3] sm:$0xff]  ;;  %v105_v28 = vld [vmem:[#allocation2] sm:$0xff] }
   0x9   :  { %v117_v11 = vld [vmem:[#allocation3 + $0x8] sm:$0xff]  ;;  %v122_v12 = vadd.f32 %v203_v8, %v116_v10  ;;  %v106_v38 = vld [vmem:[#allocation2 + $0x8] sm:$0xff]  ;;  %p218_p3 = por %p217_p2, %p216_p1 }
   0xa   :  { %v123_v13 = vadd.f32 %v204_v9, %v117_v11 }
   0xb   :  { %124 = vst.msk [vmem:[#allocation3] sm:$0xff] %vm63_vm0, %v122_v12  ;;  %p219_p4 = pnand %p218_p3, %p212_p0 }
   0xc   :  { %125 = vst.msk [vmem:[#allocation3 + $0x8] sm:$0xff] %vm63_vm0, %v123_v13 }
  0x12   :  { %v146_v35 = vld [vmem:[#allocation3] sm:$0xff] }
  0x13   :  { %v147_v36 = vld [vmem:[#allocation3 + $0x8] sm:$0xff]  ;;  %v148_v40 = vsel %vm63_vm0, %v146_v35, 0.0 }
  0x14   :  { %v149_v41 = vsel %vm63_vm0, %v147_v36, 0.0 }
  0x15   :  { %v150_v44 = vadd.f32 %v149_v41, %v148_v40 }
  0x17   :  { %v151_v45 = vrot.slane %v150_v44, 4 }
  0x19   :  { %v152_v48 = vadd.f32 %v151_v45, %v150_v44 }
  0x1b   :  { %v153_v53 = vrot.slane %v152_v48, 2 }
  0x1d   :  { %v154_v56 = vadd.f32 %v153_v53, %v152_v48 }
  0x1f   :  { %v155_v59 = vrot.slane %v154_v56, 1 }
  0x21   :  { %v156_v61 = vadd.f32 %v155_v59, %v154_v56 }
  0x7e   :  { %v76_v16 = vpop.permute.xlu0 %75 }
  0x7f   :  { %vm80_vm4 = vcmp.eq.s32.totalorder %v73_v15, %v76_v16 }
  0x80   :  { %v82_v17 = vsel %vm80_vm4, %v70_v1, 0.0 }
  0x81   :  { %v93_v18 = vsel %vm84_vm1, %v82_v17, 0.0 }
  0x82   :  { %94 = vadd.xlane.f32.xlu0 %v93_v18  ;;  %v79_v19 = vpop.permute.xlu0 %78 }
  0x83   :  { %vm81_vm5 = vcmp.eq.s32.totalorder %v73_v15, %v79_v19 }
  0x84   :  { %v83_v20 = vsel %vm81_vm5, %v71_v4, 0.0 }
  0x85   :  { %v96_v21 = vsel %vm84_vm1, %v83_v20, 0.0 }
  0x86   :  { %97 = vadd.xlane.f32.xlu1 %v96_v21 }
  0x8d   :  { %v87_v22 = vpop.xlane.xlu1 %86 }
  0x8e   :  { %v91_v25 = vmul.f32 0.0032258064, %v87_v22 }
  0x91   :  { %v90_v23 = vpop.xlane.xlu1 %89 }
  0x92   :  { %v92_v30 = vmul.f32 0.0032258064, %v90_v23 }
 0x10b   :  { %v95_v24 = vpop.xlane.xlu0 %94 }
 0x10c   :  { %v99_v26 = vmul.f32 0.8967742, %v95_v24 }
 0x10e   :  { %v101_v27 = vadd.f32 %v99_v26, %v91_v25 }
 0x10f   :  { %v98_v29 = vpop.xlane.xlu1 %97 }
 0x110   :  { %v107_v31 = vsub.f32 -0.6684817, %v101_v27  ;;  %v100_v32 = vmul.f32 0.8967742, %v98_v29 }
 0x112   :  { %v109_v33 = vsel %vm103_vm2, %v107_v31, 0.0  ;;  %v102_v34 = vadd.f32 %v100_v32, %v92_v30 }
 0x113   :  { %v111_v37 = vadd.f32 %v109_v33, %v105_v28 }
 0x114   :  { %v108_v39 = vsub.f32 -0.6684817, %v102_v34 }
 0x115   :  { %114 = vst.msk [vmem:[#allocation2] sm:$0xff] %vm63_vm0, %v111_v37 }
 0x116   :  { %v110_v42 = vsel %vm104_vm3, %v108_v39, 0.0 }
 0x117   :  { %v112_v43 = vadd.f32 %v110_v42, %v106_v38 }
 0x119   :  { %115 = vst.msk [vmem:[#allocation2 + $0x8] sm:$0xff] %vm63_vm0, %v112_v43 }
 0x11c   :  { %v129_v46 = vld [vmem:[#allocation2] sm:$0xff] }
 0x11d   :  { %v131_v49 = vsel %vm63_vm0, %v129_v46, 0.0 }
 0x120   :  { %v130_v47 = vld [vmem:[#allocation2 + $0x8] sm:$0xff] }
 0x121   :  { %v132_v50 = vsel %vm63_vm0, %v130_v47, 0.0 }
 0x122   :  { %v133_v51 = vadd.f32 %v132_v50, %v131_v49 }
 0x124   :  { %v134_v52 = vrot.slane %v133_v51, 4 }
 0x126   :  { %v135_v54 = vadd.f32 %v134_v52, %v133_v51 }
 0x128   :  { %v136_v55 = vrot.slane %v135_v54, 2 }
 0x12a   :  { %v137_v57 = vadd.f32 %v136_v55, %v135_v54 }
 0x12c   :  { %v138_v58 = vrot.slane %v137_v57, 1 }
 0x12e   :  { %v139_v60 = vadd.f32 %v138_v58, %v137_v57 }
 0x130   :  { %142 = vperm.xlu1 %210, %v139_v60  }
 0x134   :  { %159 = vperm.xlu1 %210, %v156_v61  }
 0x1ab   :  { %v143_v62 = vpop.permute.xlu1 %142 }
 0x1ac   :  { %145 = vst [vmem:[#allocation4] sm:$0xff] %v143_v62 }
 0x1ad   :  { %222 = shalt.err (!%p219_p4)
}
 0x1ae   :  { %172 = dma.vmem_to_hbm [thread:$0]  %s170_s1, 128, %s319_s2, [#allocation5]  }
 0x1af   :  { %v160_v63 = vpop.permute.xlu1 %159  ;;  %s231_s25 = scalar_lea.vmem %s180_s21, 128  ;;  %p236_p6 = scmp.lt.s32.totalorder %s180_s21, %s180_s21 }
 0x1b0   :  { %162 = vst [vmem:[#allocation6] sm:$0xff] %v160_v63  ;;  %p232_p5 = scmp.ne.s32.totalorder %s180_s21, %s231_s25  ;;  %p237_p7 = scmp.lt.s32.totalorder %s231_s25, %s231_s25 }
 0x1b2   :  { %p238_p8 = por %p237_p7, %p236_p6 }
 0x1b4   :  { %p239_p9 = pnand %p238_p8, %p232_p5 }
 0x1b6   :  { %242 = shalt.err (!%p239_p9)
}
 0x1b7   :  { %182 = dma.vmem_to_hbm [thread:$0]  %s180_s21, 128, %s320_s3, [#allocation7]  }
 0x1b8   :  { %251 = dma.done.wait [#allocation5], 128  }
 0x1b9   :  { %252 = vsyncadd [#allocation5], 4294967168 }
 0x1ba   :  { %253 = dma.done.wait [#allocation7], 128  }
 0x1bb   :  { %254 = vsyncadd [#allocation7], 4294967168 }
 0x1bc   :  { %189 = vsyncpa [#allocation5], 1 }
 0x1bd   :  { %190 = vsyncpa [#allocation7], 1 }

</bundles_post_ra>
